<compile_context>
chip_gen: v7x
topology: tpu7x:2x2x1
jax: 0.10.0
libtpu: 0.0.40
codegen_flags: <defaults>
</compile_context>

<pallas_src>
import functools

import jax
import jax.numpy as jnp
from jax import lax
from jax.experimental import pallas as pl
from jax.experimental.pallas import tpu as pltpu


def _round_up(x, m):
    return (x + m - 1) // m * m


def _cdiv(a, b):
    return (a + b - 1) // b


def _softquant_kernel(levels_ref, a_ref, b_ref, x_ref, *out_refs,
                      sigma, L, rc, compute_soft):
    """Process one lane-dense block (tn, lanes) in row-chunks of `rc` rows."""
    if compute_soft:
        soft_ref, hard_ref, sym_ref = out_refs
    else:
        hard_ref, sym_ref = out_refs

    tn = x_ref.shape[0]
    nchunks = tn // rc

    def process(r0):
        x = x_ref[pl.ds(r0, rc), :].astype(jnp.float32)

        # ---- pass 1: min / argmin over levels + fused hard gather ----------
        # d is computed exactly like the reference ((x - lv)^2, f32) so the
        # argmin (first occurrence on ties, strict '<') matches bit-for-bit.
        lv0 = levels_ref[0]
        diff = x - lv0
        dmin = diff * diff
        amin = jnp.zeros(x.shape, dtype=jnp.int32)
        hard = jnp.full_like(x, lv0)
        for l in range(1, L):                        # L is small; unrolled
            lv = levels_ref[l]
            diff = x - lv
            d = diff * diff
            take = d < dmin
            dmin = jnp.where(take, d, dmin)
            amin = jnp.where(take, l, amin)
            hard = jnp.where(take, lv, hard)         # levels[argmin] fused here

        hard_ref[pl.ds(r0, rc), :] = hard
        sym_ref[pl.ds(r0, rc), :] = amin             # int32, written directly

        if compute_soft:
            # ---- pass 2: softmax expectation (algebraic reformulation) ------
            #   softmax_l(-sigma*d_l) == softmax_l(a_l*x + b_l),
            #   a_l = 2*sigma*lv_l, b_l = -sigma*lv_l^2  (precomputed, SMEM).
            # Stabilizer m = max_l(a_l*x + b_l) = sigma*(x^2 - dmin), hoisted.
            neg_m = sigma * (dmin - x * x)
            wsum = jnp.zeros_like(x)
            lwsum = jnp.zeros_like(x)
            for l in range(L):
                lv = levels_ref[l]
                w = jnp.exp(a_ref[l] * x + b_ref[l] + neg_m)   # exp -> EUP slot
                wsum = wsum + w
                lwsum = lwsum + lv * w
            soft = lwsum * pl.reciprocal(wsum, approx=True)    # vrcp -> EUP slot
            soft_ref[pl.ds(r0, rc), :] = soft

    if nchunks <= 1:
        process(0)
    else:
        # fori_loop (not a Python for) bounds the live ranges to one chunk so
        # intermediates stay in vregs instead of round-tripping through VMEM.
        def body(r, carry):
            process(pl.multiple_of(r * rc, rc))
            return carry
        lax.fori_loop(0, nchunks, body, 0)


def _choose_tiling(total_rows, lanes, *, tile_elems=1 << 17, chunk_elems=1 << 12):
    """Pick (row tile tn, padded rows, row-chunk rc) for a (total_rows, lanes) slab."""
    rc = max(8, (chunk_elems // lanes) // 8 * 8)         # ~4K elems per chunk
    rc = min(rc, _round_up(total_rows, 8))               # don't over-pad tiny inputs
    tn_cap = max(rc, (tile_elems // lanes) // rc * rc)   # ~512 KiB f32 per tile
    if total_rows <= tn_cap:
        if total_rows >= 4 * rc:
            # split into two grid steps so "parallel" can shard across v7x's
            # two TensorCores even for mid-sized inputs
            tn = _round_up(_cdiv(total_rows, 2), rc)
        else:
            tn = _round_up(total_rows, rc)
    else:
        tn = tn_cap
    rows = _round_up(total_rows, tn)
    return tn, rows, rc


def soft_quantizer(feat, levels, sigma=0.2, *, compute_soft=True,
                   vmem_limit_bytes=16 * 1024 * 1024):
    """feat: (N, C) float, levels: (L,) float.

    Returns (x_soft_features, x_hard_features, symbols_hard, feat_soft).
    As in the PyTorch module, x_soft's forward value equals feat_hard (the
    `feat_soft.data = feat_hard` straight-through trick); the pure soft
    expectation is returned separately as `feat_soft` (None when
    compute_soft=False, which also skips its compute and writeback).
    """
    N, C = feat.shape
    L = int(levels.shape[0])
    total = N * C
    sigma = float(sigma)

    levels = levels.astype(jnp.float32)
    a = (2.0 * sigma) * levels                 # softmax-logit slope per level
    b = (-sigma) * (levels * levels)           # softmax-logit offset per level

    if feat.dtype not in (jnp.float32, jnp.bfloat16):
        feat = feat.astype(jnp.float32)

    # Lane-dense layout. When C is a multiple of 128 tile (N, C) directly
    # (no flatten / relayout HBM pass); otherwise flatten to (rows, lanes).
    direct = (C % 128 == 0) and (C <= 1024)
    if direct:
        lanes = C
        rows_min = N
    else:
        lanes = 512 if total >= 8 * 512 else 128
        rows_min = _cdiv(total, lanes)

    tn, rows, rc = _choose_tiling(rows_min, lanes)

    if direct:
        x2d = feat if rows == N else jnp.pad(feat, ((0, rows - N), (0, 0)))
    else:
        flat = feat.reshape(total)
        padded = rows * lanes
        if padded != total:
            flat = jnp.pad(flat, (0, padded - total))
        x2d = flat.reshape(rows, lanes)

    out_shapes = []
    if compute_soft:
        out_shapes.append(jax.ShapeDtypeStruct((rows, lanes), jnp.float32))  # feat_soft
    out_shapes.append(jax.ShapeDtypeStruct((rows, lanes), jnp.float32))      # feat_hard
    out_shapes.append(jax.ShapeDtypeStruct((rows, lanes), jnp.int32))        # symbols

    blk = pl.BlockSpec((tn, lanes), lambda i: (i, 0))
    smem = pl.BlockSpec(memory_space=pltpu.MemorySpace.SMEM)

    elems = rows * lanes
    flops = (12 * L + 8) * elems if compute_soft else (6 * L + 2) * elems
    transc = (L + 1) * elems if compute_soft else 0
    bytes_accessed = elems * (x2d.dtype.itemsize + 4 * len(out_shapes))

    kernel = functools.partial(_softquant_kernel, sigma=sigma, L=L, rc=rc,
                               compute_soft=compute_soft)

    outs = pl.pallas_call(
        kernel,
        out_shape=tuple(out_shapes),
        grid_spec=pltpu.PrefetchScalarGridSpec(
            num_scalar_prefetch=0,
            grid=(rows // tn,),
            in_specs=[smem, smem, smem, blk],
            out_specs=[blk] * len(out_shapes),
        ),
        compiler_params=pltpu.CompilerParams(
            dimension_semantics=("parallel",),
            vmem_limit_bytes=vmem_limit_bytes,
        ),
        cost_estimate=pl.CostEstimate(
            flops=int(flops), transcendentals=int(transc),
            bytes_accessed=int(bytes_accessed)),
    )(levels, a, b, x2d)

    if compute_soft:
        soft2d, hard2d, sym2d = outs
    else:
        hard2d, sym2d = outs
        soft2d = None

    if direct:
        unpack = (lambda t: t) if rows == N else (lambda t: t[:N])
    elif rows * lanes == total:
        unpack = lambda t: t.reshape(N, C)
    else:
        unpack = lambda t: t.reshape(rows * lanes)[:total].reshape(N, C)

    hard = unpack(hard2d)
    symbols = unpack(sym2d)
    feat_soft = unpack(soft2d) if compute_soft else None

    # Forward-value semantics of the PyTorch module: x_soft.features == feat_hard.
    # TODO(synk): the `.data` straight-through autograd trick (forward = hard,
    # gradient = soft path) would need jax.custom_vjp; only forward values here.
    # TODO(synk): MinkowskiEngine SparseTensor / coordinate_manager wrapping has
    # no Pallas equivalent; only the dense NF feature matrix is handled.
    x_soft_features = hard
    x_hard_features = hard
    return x_soft_features, x_hard_features, symbols, feat_soft


def _reference(feat, levels, sigma):
    """Pure-JAX reference mirroring the PyTorch forward (for sanity checking)."""
    N, C = feat.shape
    f = feat.reshape(N * C, 1)
    d = (f - levels[None, :]) ** 2
    phi = jax.nn.softmax(-sigma * d, axis=-1)
    soft = jnp.sum(levels * phi, axis=-1).reshape(N, C)
    sym = jnp.argmin(d, axis=-1).astype(jnp.int32).reshape(N, C)
    hard = levels[sym]
    return soft, hard, sym


if __name__ == "__main__":
    key = jax.random.PRNGKey(0)
    sigma = 0.2
    L = 8
    levels = jnp.linspace(-1.0, 1.0, L, dtype=jnp.float32)

    # Small NF shapes: ragged (padding path), and a channels-multiple-of-128
    # shape (direct path, 2 grid steps).
    for idx, (N, C) in enumerate([(256, 8), (1000, 13), (512, 256)]):
        k = jax.random.fold_in(key, idx)
        feat = jax.random.normal(k, (N, C), dtype=jnp.float32)

        x_soft, x_hard, symbols, feat_soft = soft_quantizer(feat, levels, sigma)
        jax.block_until_ready((x_soft, x_hard, symbols, feat_soft))

        ref_soft, ref_hard, ref_sym = _reference(feat, levels, sigma)
        # feat_soft is gradient-path-only; loose tolerance because of the
        # EUP approximate reciprocal in the softmax normalization.
        assert jnp.allclose(feat_soft, ref_soft, atol=1e-2, rtol=1e-2), (N, C)
        assert jnp.array_equal(x_hard, ref_hard), (N, C)
        assert jnp.array_equal(symbols, ref_sym), (N, C)
        assert jnp.array_equal(x_soft, ref_hard), (N, C)   # straight-through value

    # Inference path: skip the soft-expectation compute + writeback entirely.
    feat = jax.random.normal(jax.random.fold_in(key, 99), (256, 8), jnp.float32)
    xs, xh, sy, fs = soft_quantizer(feat, levels, sigma, compute_soft=False)
    jax.block_until_ready((xs, xh, sy))
    _, rh, rsym = _reference(feat, levels, sigma)
    assert jnp.array_equal(xh, rh)
    assert jnp.array_equal(sy, rsym)
    assert fs is None

    print("KERNEL_OK")
</pallas_src>

<mosaic_0001>
module attributes {stable_mosaic.version = 11 : i64} {
  func.func @_softquant_kernel(%arg0: i32, %arg1: memref<8xf32, #tpu.memory_space<smem>>, %arg2: memref<8xf32, #tpu.memory_space<smem>>, %arg3: memref<8xf32, #tpu.memory_space<smem>>, %arg4: memref<16x128xf32, #tpu.memory_space<vmem>>, %arg5: memref<16x128xf32, #tpu.memory_space<vmem>>, %arg6: memref<16x128xf32, #tpu.memory_space<vmem>>, %arg7: memref<16x128xi32, #tpu.memory_space<vmem>>) attributes {dimension_semantics = [#tpu.dimension_semantics<parallel>], iteration_bounds = array<i64: 1>, scalar_prefetch = 0 : i64, scratch_operands = 0 : i64, tpu.core_type = #tpu.core_type<tc>, window_params = [{transform_indices = @transform_0, window_bounds = array<i64: 8>}, {transform_indices = @transform_1, window_bounds = array<i64: 8>}, {transform_indices = @transform_2, window_bounds = array<i64: 8>}, {transform_indices = @transform_3, window_bounds = array<i64: 16, 128>}, {transform_indices = @transform_4, window_bounds = array<i64: 16, 128>}, {transform_indices = @transform_5, window_bounds = array<i64: 16, 128>}, {transform_indices = @transform_6, window_bounds = array<i64: 16, 128>}]} {
    %c0 = arith.constant 0 : index
    %c0_0 = arith.constant 0 : index
    %0 = vector.load %arg4[%c0, %c0_0] : memref<16x128xf32, #tpu.memory_space<vmem>>, vector<16x128xf32>
    %c0_1 = arith.constant 0 : index
    %1 = memref.load %arg1[%c0_1] : memref<8xf32, #tpu.memory_space<smem>>
    %2 = vector.broadcast %1 : f32 to vector<16x128xf32>
    %3 = arith.subf %0, %2 : vector<16x128xf32>
    %4 = arith.mulf %3, %3 : vector<16x128xf32>
    %c0_i32 = arith.constant 0 : i32
    %5 = vector.broadcast %c0_i32 : i32 to vector<16x128xi32>
    %6 = vector.broadcast %1 : f32 to vector<16x128xf32>
    %c1 = arith.constant 1 : index
    %7 = memref.load %arg1[%c1] : memref<8xf32, #tpu.memory_space<smem>>
    %8 = vector.broadcast %7 : f32 to vector<16x128xf32>
    %9 = arith.subf %0, %8 : vector<16x128xf32>
    %10 = arith.mulf %9, %9 : vector<16x128xf32>
    %11 = arith.cmpf olt, %10, %4 : vector<16x128xf32>
    %12 = arith.select %11, %10, %4 : vector<16x128xi1>, vector<16x128xf32>
    %c1_i32 = arith.constant 1 : i32
    %13 = vector.broadcast %c1_i32 : i32 to vector<16x128xi32>
    %14 = arith.select %11, %13, %5 : vector<16x128xi1>, vector<16x128xi32>
    %15 = vector.broadcast %7 : f32 to vector<16x128xf32>
    %16 = arith.select %11, %15, %6 : vector<16x128xi1>, vector<16x128xf32>
    %c2 = arith.constant 2 : index
    %17 = memref.load %arg1[%c2] : memref<8xf32, #tpu.memory_space<smem>>
    %18 = vector.broadcast %17 : f32 to vector<16x128xf32>
    %19 = arith.subf %0, %18 : vector<16x128xf32>
    %20 = arith.mulf %19, %19 : vector<16x128xf32>
    %21 = arith.cmpf olt, %20, %12 : vector<16x128xf32>
    %22 = arith.select %21, %20, %12 : vector<16x128xi1>, vector<16x128xf32>
    %c2_i32 = arith.constant 2 : i32
    %23 = vector.broadcast %c2_i32 : i32 to vector<16x128xi32>
    %24 = arith.select %21, %23, %14 : vector<16x128xi1>, vector<16x128xi32>
    %25 = vector.broadcast %17 : f32 to vector<16x128xf32>
    %26 = arith.select %21, %25, %16 : vector<16x128xi1>, vector<16x128xf32>
    %c3 = arith.constant 3 : index
    %27 = memref.load %arg1[%c3] : memref<8xf32, #tpu.memory_space<smem>>
    %28 = vector.broadcast %27 : f32 to vector<16x128xf32>
    %29 = arith.subf %0, %28 : vector<16x128xf32>
    %30 = arith.mulf %29, %29 : vector<16x128xf32>
    %31 = arith.cmpf olt, %30, %22 : vector<16x128xf32>
    %32 = arith.select %31, %30, %22 : vector<16x128xi1>, vector<16x128xf32>
    %c3_i32 = arith.constant 3 : i32
    %33 = vector.broadcast %c3_i32 : i32 to vector<16x128xi32>
    %34 = arith.select %31, %33, %24 : vector<16x128xi1>, vector<16x128xi32>
    %35 = vector.broadcast %27 : f32 to vector<16x128xf32>
    %36 = arith.select %31, %35, %26 : vector<16x128xi1>, vector<16x128xf32>
    %c4 = arith.constant 4 : index
    %37 = memref.load %arg1[%c4] : memref<8xf32, #tpu.memory_space<smem>>
    %38 = vector.broadcast %37 : f32 to vector<16x128xf32>
    %39 = arith.subf %0, %38 : vector<16x128xf32>
    %40 = arith.mulf %39, %39 : vector<16x128xf32>
    %41 = arith.cmpf olt, %40, %32 : vector<16x128xf32>
    %42 = arith.select %41, %40, %32 : vector<16x128xi1>, vector<16x128xf32>
    %c4_i32 = arith.constant 4 : i32
    %43 = vector.broadcast %c4_i32 : i32 to vector<16x128xi32>
    %44 = arith.select %41, %43, %34 : vector<16x128xi1>, vector<16x128xi32>
    %45 = vector.broadcast %37 : f32 to vector<16x128xf32>
    %46 = arith.select %41, %45, %36 : vector<16x128xi1>, vector<16x128xf32>
    %c5 = arith.constant 5 : index
    %47 = memref.load %arg1[%c5] : memref<8xf32, #tpu.memory_space<smem>>
    %48 = vector.broadcast %47 : f32 to vector<16x128xf32>
    %49 = arith.subf %0, %48 : vector<16x128xf32>
    %50 = arith.mulf %49, %49 : vector<16x128xf32>
    %51 = arith.cmpf olt, %50, %42 : vector<16x128xf32>
    %52 = arith.select %51, %50, %42 : vector<16x128xi1>, vector<16x128xf32>
    %c5_i32 = arith.constant 5 : i32
    %53 = vector.broadcast %c5_i32 : i32 to vector<16x128xi32>
    %54 = arith.select %51, %53, %44 : vector<16x128xi1>, vector<16x128xi32>
    %55 = vector.broadcast %47 : f32 to vector<16x128xf32>
    %56 = arith.select %51, %55, %46 : vector<16x128xi1>, vector<16x128xf32>
    %c6 = arith.constant 6 : index
    %57 = memref.load %arg1[%c6] : memref<8xf32, #tpu.memory_space<smem>>
    %58 = vector.broadcast %57 : f32 to vector<16x128xf32>
    %59 = arith.subf %0, %58 : vector<16x128xf32>
    %60 = arith.mulf %59, %59 : vector<16x128xf32>
    %61 = arith.cmpf olt, %60, %52 : vector<16x128xf32>
    %62 = arith.select %61, %60, %52 : vector<16x128xi1>, vector<16x128xf32>
    %c6_i32 = arith.constant 6 : i32
    %63 = vector.broadcast %c6_i32 : i32 to vector<16x128xi32>
    %64 = arith.select %61, %63, %54 : vector<16x128xi1>, vector<16x128xi32>
    %65 = vector.broadcast %57 : f32 to vector<16x128xf32>
    %66 = arith.select %61, %65, %56 : vector<16x128xi1>, vector<16x128xf32>
    %c7 = arith.constant 7 : index
    %67 = memref.load %arg1[%c7] : memref<8xf32, #tpu.memory_space<smem>>
    %68 = vector.broadcast %67 : f32 to vector<16x128xf32>
    %69 = arith.subf %0, %68 : vector<16x128xf32>
    %70 = arith.mulf %69, %69 : vector<16x128xf32>
    %71 = arith.cmpf olt, %70, %62 : vector<16x128xf32>
    %72 = arith.select %71, %70, %62 : vector<16x128xi1>, vector<16x128xf32>
    %c7_i32 = arith.constant 7 : i32
    %73 = vector.broadcast %c7_i32 : i32 to vector<16x128xi32>
    %74 = arith.select %71, %73, %64 : vector<16x128xi1>, vector<16x128xi32>
    %75 = vector.broadcast %67 : f32 to vector<16x128xf32>
    %76 = arith.select %71, %75, %66 : vector<16x128xi1>, vector<16x128xf32>
    %c0_2 = arith.constant 0 : index
    %c0_3 = arith.constant 0 : index
    %77 = vector.load %arg6[%c0_2, %c0_3] : memref<16x128xf32, #tpu.memory_space<vmem>>, vector<16x128xf32>
    tpu.vector_store %arg6[%c0_2, %c0_3], %76 {strides = array<i32>} : memref<16x128xf32, #tpu.memory_space<vmem>>, vector<16x128xf32>,
    %c0_4 = arith.constant 0 : index
    %c0_5 = arith.constant 0 : index
    %78 = vector.load %arg7[%c0_4, %c0_5] : memref<16x128xi32, #tpu.memory_space<vmem>>, vector<16x128xi32>
    tpu.vector_store %arg7[%c0_4, %c0_5], %74 {strides = array<i32>} : memref<16x128xi32, #tpu.memory_space<vmem>>, vector<16x128xi32>,
    %79 = arith.mulf %0, %0 : vector<16x128xf32>
    %80 = arith.subf %72, %79 : vector<16x128xf32>
    %cst = arith.constant 2.000000e-01 : f32
    %81 = vector.broadcast %cst : f32 to vector<16x128xf32>
    %82 = arith.mulf %81, %80 : vector<16x128xf32>
    %cst_6 = arith.constant 0.000000e+00 : f32
    %83 = vector.broadcast %cst_6 : f32 to vector<16x128xf32>
    %cst_7 = arith.constant 0.000000e+00 : f32
    %84 = vector.broadcast %cst_7 : f32 to vector<16x128xf32>
    %c0_8 = arith.constant 0 : index
    %85 = memref.load %arg1[%c0_8] : memref<8xf32, #tpu.memory_space<smem>>
    %c0_9 = arith.constant 0 : index
    %86 = memref.load %arg2[%c0_9] : memref<8xf32, #tpu.memory_space<smem>>
    %87 = vector.broadcast %86 : f32 to vector<16x128xf32>
    %88 = arith.mulf %87, %0 : vector<16x128xf32>
    %c0_10 = arith.constant 0 : index
    %89 = memref.load %arg3[%c0_10] : memref<8xf32, #tpu.memory_space<smem>>
    %90 = vector.broadcast %89 : f32 to vector<16x128xf32>
    %91 = arith.addf %88, %90 : vector<16x128xf32>
    %92 = arith.addf %91, %82 : vector<16x128xf32>
    %93 = math.exp %92 : vector<16x128xf32>
    %94 = arith.addf %83, %93 : vector<16x128xf32>
    %95 = vector.broadcast %85 : f32 to vector<16x128xf32>
    %96 = arith.mulf %95, %93 : vector<16x128xf32>
    %97 = arith.addf %84, %96 : vector<16x128xf32>
    %c1_11 = arith.constant 1 : index
    %98 = memref.load %arg1[%c1_11] : memref<8xf32, #tpu.memory_space<smem>>
    %c1_12 = arith.constant 1 : index
    %99 = memref.load %arg2[%c1_12] : memref<8xf32, #tpu.memory_space<smem>>
    %100 = vector.broadcast %99 : f32 to vector<16x128xf32>
    %101 = arith.mulf %100, %0 : vector<16x128xf32>
    %c1_13 = arith.constant 1 : index
    %102 = memref.load %arg3[%c1_13] : memref<8xf32, #tpu.memory_space<smem>>
    %103 = vector.broadcast %102 : f32 to vector<16x128xf32>
    %104 = arith.addf %101, %103 : vector<16x128xf32>
    %105 = arith.addf %104, %82 : vector<16x128xf32>
    %106 = math.exp %105 : vector<16x128xf32>
    %107 = arith.addf %94, %106 : vector<16x128xf32>
    %108 = vector.broadcast %98 : f32 to vector<16x128xf32>
    %109 = arith.mulf %108, %106 : vector<16x128xf32>
    %110 = arith.addf %97, %109 : vector<16x128xf32>
    %c2_14 = arith.constant 2 : index
    %111 = memref.load %arg1[%c2_14] : memref<8xf32, #tpu.memory_space<smem>>
    %c2_15 = arith.constant 2 : index
    %112 = memref.load %arg2[%c2_15] : memref<8xf32, #tpu.memory_space<smem>>
    %113 = vector.broadcast %112 : f32 to vector<16x128xf32>
    %114 = arith.mulf %113, %0 : vector<16x128xf32>
    %c2_16 = arith.constant 2 : index
    %115 = memref.load %arg3[%c2_16] : memref<8xf32, #tpu.memory_space<smem>>
    %116 = vector.broadcast %115 : f32 to vector<16x128xf32>
    %117 = arith.addf %114, %116 : vector<16x128xf32>
    %118 = arith.addf %117, %82 : vector<16x128xf32>
    %119 = math.exp %118 : vector<16x128xf32>
    %120 = arith.addf %107, %119 : vector<16x128xf32>
    %121 = vector.broadcast %111 : f32 to vector<16x128xf32>
    %122 = arith.mulf %121, %119 : vector<16x128xf32>
    %123 = arith.addf %110, %122 : vector<16x128xf32>
    %c3_17 = arith.constant 3 : index
    %124 = memref.load %arg1[%c3_17] : memref<8xf32, #tpu.memory_space<smem>>
    %c3_18 = arith.constant 3 : index
    %125 = memref.load %arg2[%c3_18] : memref<8xf32, #tpu.memory_space<smem>>
    %126 = vector.broadcast %125 : f32 to vector<16x128xf32>
    %127 = arith.mulf %126, %0 : vector<16x128xf32>
    %c3_19 = arith.constant 3 : index
    %128 = memref.load %arg3[%c3_19] : memref<8xf32, #tpu.memory_space<smem>>
    %129 = vector.broadcast %128 : f32 to vector<16x128xf32>
    %130 = arith.addf %127, %129 : vector<16x128xf32>
    %131 = arith.addf %130, %82 : vector<16x128xf32>
    %132 = math.exp %131 : vector<16x128xf32>
    %133 = arith.addf %120, %132 : vector<16x128xf32>
    %134 = vector.broadcast %124 : f32 to vector<16x128xf32>
    %135 = arith.mulf %134, %132 : vector<16x128xf32>
    %136 = arith.addf %123, %135 : vector<16x128xf32>
    %c4_20 = arith.constant 4 : index
    %137 = memref.load %arg1[%c4_20] : memref<8xf32, #tpu.memory_space<smem>>
    %c4_21 = arith.constant 4 : index
    %138 = memref.load %arg2[%c4_21] : memref<8xf32, #tpu.memory_space<smem>>
    %139 = vector.broadcast %138 : f32 to vector<16x128xf32>
    %140 = arith.mulf %139, %0 : vector<16x128xf32>
    %c4_22 = arith.constant 4 : index
    %141 = memref.load %arg3[%c4_22] : memref<8xf32, #tpu.memory_space<smem>>
    %142 = vector.broadcast %141 : f32 to vector<16x128xf32>
    %143 = arith.addf %140, %142 : vector<16x128xf32>
    %144 = arith.addf %143, %82 : vector<16x128xf32>
    %145 = math.exp %144 : vector<16x128xf32>
    %146 = arith.addf %133, %145 : vector<16x128xf32>
    %147 = vector.broadcast %137 : f32 to vector<16x128xf32>
    %148 = arith.mulf %147, %145 : vector<16x128xf32>
    %149 = arith.addf %136, %148 : vector<16x128xf32>
    %c5_23 = arith.constant 5 : index
    %150 = memref.load %arg1[%c5_23] : memref<8xf32, #tpu.memory_space<smem>>
    %c5_24 = arith.constant 5 : index
    %151 = memref.load %arg2[%c5_24] : memref<8xf32, #tpu.memory_space<smem>>
    %152 = vector.broadcast %151 : f32 to vector<16x128xf32>
    %153 = arith.mulf %152, %0 : vector<16x128xf32>
    %c5_25 = arith.constant 5 : index
    %154 = memref.load %arg3[%c5_25] : memref<8xf32, #tpu.memory_space<smem>>
    %155 = vector.broadcast %154 : f32 to vector<16x128xf32>
    %156 = arith.addf %153, %155 : vector<16x128xf32>
    %157 = arith.addf %156, %82 : vector<16x128xf32>
    %158 = math.exp %157 : vector<16x128xf32>
    %159 = arith.addf %146, %158 : vector<16x128xf32>
    %160 = vector.broadcast %150 : f32 to vector<16x128xf32>
    %161 = arith.mulf %160, %158 : vector<16x128xf32>
    %162 = arith.addf %149, %161 : vector<16x128xf32>
    %c6_26 = arith.constant 6 : index
    %163 = memref.load %arg1[%c6_26] : memref<8xf32, #tpu.memory_space<smem>>
    %c6_27 = arith.constant 6 : index
    %164 = memref.load %arg2[%c6_27] : memref<8xf32, #tpu.memory_space<smem>>
    %165 = vector.broadcast %164 : f32 to vector<16x128xf32>
    %166 = arith.mulf %165, %0 : vector<16x128xf32>
    %c6_28 = arith.constant 6 : index
    %167 = memref.load %arg3[%c6_28] : memref<8xf32, #tpu.memory_space<smem>>
    %168 = vector.broadcast %167 : f32 to vector<16x128xf32>
    %169 = arith.addf %166, %168 : vector<16x128xf32>
    %170 = arith.addf %169, %82 : vector<16x128xf32>
    %171 = math.exp %170 : vector<16x128xf32>
    %172 = arith.addf %159, %171 : vector<16x128xf32>
    %173 = vector.broadcast %163 : f32 to vector<16x128xf32>
    %174 = arith.mulf %173, %171 : vector<16x128xf32>
    %175 = arith.addf %162, %174 : vector<16x128xf32>
    %c7_29 = arith.constant 7 : index
    %176 = memref.load %arg1[%c7_29] : memref<8xf32, #tpu.memory_space<smem>>
    %c7_30 = arith.constant 7 : index
    %177 = memref.load %arg2[%c7_30] : memref<8xf32, #tpu.memory_space<smem>>
    %178 = vector.broadcast %177 : f32 to vector<16x128xf32>
    %179 = arith.mulf %178, %0 : vector<16x128xf32>
    %c7_31 = arith.constant 7 : index
    %180 = memref.load %arg3[%c7_31] : memref<8xf32, #tpu.memory_space<smem>>
    %181 = vector.broadcast %180 : f32 to vector<16x128xf32>
    %182 = arith.addf %179, %181 : vector<16x128xf32>
    %183 = arith.addf %182, %82 : vector<16x128xf32>
    %184 = math.exp %183 : vector<16x128xf32>
    %185 = arith.addf %172, %184 : vector<16x128xf32>
    %186 = vector.broadcast %176 : f32 to vector<16x128xf32>
    %187 = arith.mulf %186, %184 : vector<16x128xf32>
    %188 = arith.addf %175, %187 : vector<16x128xf32>
    %189 = tpu.reciprocal %185 {approx = true} : vector<16x128xf32> -> vector<16x128xf32>
    %190 = arith.mulf %188, %189 : vector<16x128xf32>
    %c0_32 = arith.constant 0 : index
    %c0_33 = arith.constant 0 : index
    %191 = vector.load %arg5[%c0_32, %c0_33] : memref<16x128xf32, #tpu.memory_space<vmem>>, vector<16x128xf32>
    tpu.vector_store %arg5[%c0_32, %c0_33], %190 {strides = array<i32>} : memref<16x128xf32, #tpu.memory_space<vmem>>, vector<16x128xf32>,
    return
  }
  func.func @transform_0(%arg0: i32) -> i32 {
    %c0_i32 = arith.constant 0 : i32
    %c0_i32_0 = arith.constant 0 : i32
    return %c0_i32 : i32
  }
  func.func @transform_1(%arg0: i32) -> i32 {
    %c0_i32 = arith.constant 0 : i32
    %c0_i32_0 = arith.constant 0 : i32
    return %c0_i32 : i32
  }
  func.func @transform_2(%arg0: i32) -> i32 {
    %c0_i32 = arith.constant 0 : i32
    %c0_i32_0 = arith.constant 0 : i32
    return %c0_i32 : i32
  }
  func.func @transform_3(%arg0: i32) -> (i32, i32) {
    %c0_i32 = arith.constant 0 : i32
    %c0_i32_0 = arith.constant 0 : i32
    return %arg0, %c0_i32 : i32, i32
  }
  func.func @transform_4(%arg0: i32) -> (i32, i32) {
    %c0_i32 = arith.constant 0 : i32
    %c0_i32_0 = arith.constant 0 : i32
    return %arg0, %c0_i32 : i32, i32
  }
  func.func @transform_5(%arg0: i32) -> (i32, i32) {
    %c0_i32 = arith.constant 0 : i32
    %c0_i32_0 = arith.constant 0 : i32
    return %arg0, %c0_i32 : i32, i32
  }
  func.func @transform_6(%arg0: i32) -> (i32, i32) {
    %c0_i32 = arith.constant 0 : i32
    %c0_i32_0 = arith.constant 0 : i32
    return %arg0, %c0_i32 : i32, i32
  }
}

</mosaic_0001>

<bundles_post_ra>
// kernel: tpu_custom_call.1
= control target key start
LH: loop header
LB: loop body
LE: loop exit
PB: predicated region body
PF: predicated region fallthrough
CT: control target
= control target key end

     0   :  { %s1084_s0 = inlined_call_operand.hbm [shape: f32[8], index: 0, kind: input, shape index: {}]   ;;  %s1085_s1 = inlined_call_operand.vmem [shape: f32[8], index: 1, kind: input, shape index: {}]   ;;  %s1086_s2 = inlined_call_operand.vmem [shape: f32[8], index: 2, kind: input, shape index: {}]   ;;  %s1087_s3 = inlined_call_operand.hbm [shape: f32[16,128], index: 3, kind: input, shape index: {}]   ;;  %s1088_s4 = inlined_call_operand.hbm [shape: f32[16,128], index: 4, kind: output, shape index: {0}]   ;;  %s1089_s5 = inlined_call_operand.hbm [shape: f32[16,128], index: 5, kind: output, shape index: {1}]   ;;  %s1090_s6 = inlined_call_operand.hbm [shape: s32[16,128], index: 6, kind: output, shape index: {2}]  }
   0x1   :  { %1092 = sst [smem:[#allocation21_spill]] %s1088_s4 }
   0x2   :  { %12 = vsyncpa [#allocation5], 0 }
   0x3   :  { %13 = vsyncpa [#allocation6], 0 }
   0x4   :  { %14 = vsyncpa [#allocation9], 0 }
   0x5   :  { %15 = vsyncpa [#allocation3], 0 }
   0x6   :  { %16 = vsyncpa [#allocation4], 0 }
   0x7   :  { %17 = vsyncpa [#allocation13], 0  ;;  %s32_s23 = sshll.u32 %s1085_s1, 4  ;;  %s494_s26 = scalar_lea.hbm %s1084_s0, 16  ;;  %s33_s23 = int_to_ptr.vmem [resolvable:$true] %s32_s23 }
   0x8   :  { %p495_p0 = scmp.ne.s32.totalorder %s1084_s0, %s494_s26  ;;  %p498_p1 = scmp.lt.u32.totalorder %s494_s26, %s1084_s0 }
   0xa   :  { %p500_p2 = pnand %p498_p1, %p495_p0 }
   0xc   :  { %503 = shalt.err (!%p500_p2)
}
   0xd   :  { %s628_s7 = smov [#allocation2]   ;;  %s504_s1 = scalar_lea.vmem %s33_s23, 16 }
   0xe   :  { %25 = dma.hbm_to_smem %s1084_s0, 16, %s628_s7, [#allocation5]  }
   0xf   :  { %p505_p3 = scmp.ne.s32.totalorder %s33_s23, %s504_s1  ;;  %p509_p4 = scmp.lt.s32.totalorder %s33_s23, %s33_s23 }
  0x10   :  { %p510_p5 = scmp.lt.s32.totalorder %s504_s1, %s504_s1 }
  0x12   :  { %p511_p6 = por %p510_p5, %p509_p4 }
  0x14   :  { %p512_p7 = pnand %p511_p6, %p505_p3 }
  0x16   :  { %515 = shalt.err (!%p512_p7)
}
  0x17   :  { %s629_s10 = smov [#allocation7]   ;;  %s42_s13 = sshll.u32 %s1086_s2, 4  ;;  %s43_s13 = int_to_ptr.vmem [resolvable:$true] %s42_s13 }
  0x18   :  { %35 = dma.vmem_to_smem %s33_s23, 16, %s629_s10, [#allocation6]  }
  0x19   :  { %s516_s14 = scalar_lea.vmem %s43_s13, 16  ;;  %p521_p9 = scmp.lt.s32.totalorder %s43_s13, %s43_s13 }
  0x1a   :  { %p517_p8 = scmp.ne.s32.totalorder %s43_s13, %s516_s14  ;;  %p522_p10 = scmp.lt.s32.totalorder %s516_s14, %s516_s14 }
  0x1c   :  { %p523_p11 = por %p522_p10, %p521_p9 }
  0x1e   :  { %p524_p12 = pnand %p523_p11, %p517_p8 }
  0x20   :  { %527 = shalt.err (!%p524_p12)
}
  0x21   :  { %s630_s0 = smov [#allocation8]   ;;  %s631_s15 = smov [#allocation10]  }
  0x22   :  { %45 = dma.vmem_to_smem %s43_s13, 16, %s630_s0, [#allocation9]  }
  0x23   :  { %s51_s16 = sshll.u32 %s631_s15, 4  ;;  %s528_s19 = scalar_lea.hbm %s1087_s3, 256  ;;  %s52_s16 = int_to_ptr.vmem [resolvable:$true] %s51_s16 }
  0x24   :  { %p529_p13 = scmp.ne.s32.totalorder %s1087_s3, %s528_s19  ;;  %p532_p0 = scmp.lt.u32.totalorder %s528_s19, %s1087_s3 }
  0x26   :  { %p534_p1 = pnand %p532_p0, %p529_p13 }
  0x28   :  { %537 = shalt.err (!%p534_p1)
}
  0x29   :  { %s538_s23 = scalar_lea.vmem %s52_s16, 256  ;;  %p543_p3 = scmp.lt.s32.totalorder %s52_s16, %s52_s16 }
  0x2a   :  { %p539_p2 = scmp.ne.s32.totalorder %s52_s16, %s538_s23  ;;  %p544_p4 = scmp.lt.s32.totalorder %s538_s23, %s538_s23 }
  0x2c   :  { %p545_p5 = por %p544_p4, %p543_p3 }
  0x2e   :  { %p546_p6 = pnand %p545_p5, %p539_p2 }
  0x30   :  { %549 = shalt.err (!%p546_p6)
}
  0x31   :  { %s632_s24 = smov 128   ;;  %s633_s25 = smov 8  }
  0x32   :  { %57 = dma.hbm_to_vmem [thread:$0]  %s1087_s3, 256, %s52_s16, [#allocation3], %s632_s24, %s632_s24, %s633_s25  }
  0x33   :  { %616 = dma.done.wait [#allocation5], 16  }
  0x34   :  { %617 = vsyncadd [#allocation5], 4294967280 }
  0x35   :  { %618 = dma.done.wait [#allocation6], 16  }
  0x36   :  { %619 = vsyncadd [#allocation6], 4294967280 }
  0x37   :  { %620 = dma.done.wait [#allocation9], 16  }
  0x38   :  { %621 = vsyncadd [#allocation9], 4294967280 }
  0x39   :  { %622 = dma.done.wait [#allocation3], 256  }
  0x3a   :  { %623 = vsyncadd [#allocation3], 4294967040 }
  0x3b   :  { %70 = sfence }
  0x3c   :  { %s73_s28 = sld [smem:[#allocation2]]  ;;  %s420_s29 = sld [smem:[#allocation2 + $0x1]]  ;;  %v706_v0 = vld [vmem:[#allocation10] sm:$0xff]  ;;  %v712_v2 = vld [vmem:[#allocation10 + $0x8] sm:$0xff]  ;;  %v634_v62 = vmov 0  }
  0x3d   :  { %s421_s30 = sld [smem:[#allocation2 + $0x2]]  ;;  %s422_s7 = sld [smem:[#allocation2 + $0x3]]  ;;  %v710_v1 = vmul.f32 %v706_v0, %v706_v0  ;;  %v720_v5 = vmul.f32 %v712_v2, %v712_v2 }
  0x3e   :  { %s423_s8 = sld [smem:[#allocation2 + $0x4]]  ;;  %s424_s9 = sld [smem:[#allocation2 + $0x5]] }
  0x3f   :  { %s425_s1 = sld [smem:[#allocation2 + $0x6]]  ;;  %s426_s10 = sld [smem:[#allocation2 + $0x7]] }
  0x40   :  { %s839_s3 = sld [smem:[#allocation7]]  ;;  %s846_s12 = sld [smem:[#allocation7 + $0x1]] }
  0x41   :  { %s844_s11 = sld [smem:[#allocation8]]  ;;  %s857_s13 = sld [smem:[#allocation8 + $0x1]] }
  0x42   :  { %v714_v3 = vstv %s73_s28  ;;  %v716_v4 = vstv %s420_s29  ;;  %s859_s14 = sld [smem:[#allocation7 + $0x2]]  ;;  %s867_s15 = sld [smem:[#allocation7 + $0x3]] }
  0x43   :  { %v75_v6 = vsub.f32 %v706_v0, %v714_v3  ;;  %v81_v7 = vsub.f32 %v706_v0, %v716_v4  ;;  %v726_v8 = vstv %s421_s30  ;;  %v728_v9 = vstv %s422_s7  ;;  %s865_s0 = sld [smem:[#allocation8 + $0x2]]  ;;  %s878_s16 = sld [smem:[#allocation8 + $0x3]] }
  0x44   :  { %v95_v10 = vsub.f32 %v706_v0, %v726_v8  ;;  %v109_v11 = vsub.f32 %v706_v0, %v728_v9  ;;  %v734_v12 = vstv %s423_s8  ;;  %v736_v13 = vstv %s424_s9  ;;  %s885_s17 = sld [smem:[#allocation7 + $0x4]]  ;;  %s896_s19 = sld [smem:[#allocation7 + $0x5]] }
  0x45   :  { %v738_v14 = vmul.f32 %v75_v6, %v75_v6  ;;  %v740_v15 = vmul.f32 %v81_v7, %v81_v7  ;;  %v123_v16 = vsub.f32 %v706_v0, %v734_v12  ;;  %v137_v17 = vsub.f32 %v706_v0, %v736_v13  ;;  %s887_s18 = sld [smem:[#allocation8 + $0x4]]  ;;  %s635_s20 = smov [#allocation12]  }
  0x46   :  { %v746_v18 = vmul.f32 %v95_v10, %v95_v10  ;;  %v748_v19 = vmul.f32 %v109_v11, %v109_v11  ;;  %v750_v20 = vstv %s425_s1  ;;  %v752_v21 = vstv %s426_s10  ;;  %s386_s21 = sshll.u32 %s635_s20, 4  ;;  %s909_s2 = sld [smem:[#allocation8 + $0x5]]  ;;  %s923_s21 = int_to_ptr.vmem [resolvable:$true] %s386_s21 }
  0x47   :  { %vm85_vm0 = vcmp.lt.f32.partialorder %v740_v15, %v738_v14  ;;  %v756_v22 = vmul.f32 %v123_v16, %v123_v16  ;;  %v758_v23 = vmul.f32 %v137_v17, %v137_v17  ;;  %v151_v24 = vsub.f32 %v706_v0, %v750_v20  ;;  %s911_s22 = sld [smem:[#allocation7 + $0x6]]  ;;  %s636_s23 = smov [#allocation14]  }
  0x48   :  { %v767_v25 = vsel %vm85_vm0, %v740_v15, %v738_v14  ;;  %v91_v26 = vsel %vm85_vm0, %v716_v4, %v714_v3  ;;  %v165_v27 = vsub.f32 %v706_v0, %v752_v21  ;;  %v76_v28 = vsub.f32 %v712_v2, %v714_v3  ;;  %s398_s26 = sshll.u32 %s636_s23, 4  ;;  %s921_s27 = sld [smem:[#allocation8 + $0x6]]  ;;  %s938_s26 = int_to_ptr.vmem [resolvable:$true] %s398_s26 }
  0x49   :  { %vm99_vm1 = vcmp.lt.f32.partialorder %v746_v18, %v767_v25  ;;  %v780_v29 = vmul.f32 %v151_v24, %v151_v24  ;;  %v82_v30 = vsub.f32 %v712_v2, %v716_v4  ;;  %v96_v31 = vsub.f32 %v712_v2, %v726_v8  ;;  %s930_s28 = sld [smem:[#allocation7 + $0x7]]  ;;  %s550_s30 = scalar_lea.vmem %s923_s21, 256 }
  0x4a   :  { %v791_v32 = vsel %vm99_vm1, %v746_v18, %v767_v25  ;;  %v105_v33 = vsel %vm99_vm1, %v726_v8, %v91_v26  ;;  %v797_v34 = vmul.f32 %v165_v27, %v165_v27  ;;  %v78_v35 = vmul.f32 %v76_v28, %v76_v28  ;;  %s936_s29 = sld [smem:[#allocation8 + $0x7]]  ;;  %p551_p7 = scmp.ne.s32.totalorder %s923_s21, %s550_s30 }
  0x4b   :  { %vm113_vm2 = vcmp.lt.f32.partialorder %v748_v19, %v791_v32  ;;  %v84_v36 = vmul.f32 %v82_v30, %v82_v30  ;;  %v98_v37 = vmul.f32 %v96_v31, %v96_v31  ;;  %v110_v38 = vsub.f32 %v712_v2, %v728_v9  ;;  %p555_p8 = scmp.lt.s32.totalorder %s923_s21, %s923_s21  ;;  %p556_p9 = scmp.lt.s32.totalorder %s550_s30, %s550_s30 }
  0x4c   :  { %v115_v39 = vsel %vm113_vm2, %v748_v19, %v791_v32  ;;  %v119_v40 = vsel %vm113_vm2, %v728_v9, %v105_v33  ;;  %v124_v41 = vsub.f32 %v712_v2, %v734_v12  ;;  %v138_v42 = vsub.f32 %v712_v2, %v736_v13 }
  0x4d   :  { %vm127_vm3 = vcmp.lt.f32.partialorder %v756_v22, %v115_v39  ;;  %vm86_vm4 = vcmp.lt.f32.partialorder %v84_v36, %v78_v35  ;;  %v112_v43 = vmul.f32 %v110_v38, %v110_v38  ;;  %v152_v44 = vsub.f32 %v712_v2, %v750_v20  ;;  %p557_p10 = por %p556_p9, %p555_p8 }
  0x4e   :  { %v129_v45 = vsel %vm127_vm3, %v756_v22, %v115_v39  ;;  %v133_v46 = vsel %vm127_vm3, %v734_v12, %v119_v40  ;;  %v88_v47 = vsel %vm86_vm4, %v84_v36, %v78_v35  ;;  %v92_v48 = vsel %vm86_vm4, %v716_v4, %v714_v3 }
  0x4f   :  { %vm141_vm5 = vcmp.lt.f32.partialorder %v758_v23, %v129_v45  ;;  %vm100_vm6 = vcmp.lt.f32.partialorder %v98_v37, %v88_v47  ;;  %v126_v49 = vmul.f32 %v124_v41, %v124_v41  ;;  %v140_v50 = vmul.f32 %v138_v42, %v138_v42  ;;  %p558_p11 = pnand %p557_p10, %p551_p7 }
  0x50   :  { %v143_v51 = vsel %vm141_vm5, %v758_v23, %v129_v45  ;;  %v147_v52 = vsel %vm141_vm5, %v736_v13, %v133_v46  ;;  %v102_v53 = vsel %vm100_vm6, %v98_v37, %v88_v47  ;;  %v106_v54 = vsel %vm100_vm6, %v726_v8, %v92_v48 }
  0x51   :  { %vm155_vm7 = vcmp.lt.f32.partialorder %v780_v29, %v143_v51  ;;  %vm114_vm8 = vcmp.lt.f32.partialorder %v112_v43, %v102_v53  ;;  %v154_v55 = vmul.f32 %v152_v44, %v152_v44  ;;  %v166_v56 = vsub.f32 %v712_v2, %v752_v21 }
  0x52   :  { %v157_v57 = vsel %vm155_vm7, %v780_v29, %v143_v51  ;;  %v161_v58 = vsel %vm155_vm7, %v750_v20, %v147_v52  ;;  %v116_v59 = vsel %vm114_vm8, %v112_v43, %v102_v53  ;;  %v120_v60 = vsel %vm114_vm8, %v728_v9, %v106_v54 }
  0x53   :  { %vm169_vm9 = vcmp.lt.f32.partialorder %v797_v34, %v157_v57  ;;  %vm128_vm10 = vcmp.lt.f32.partialorder %v126_v49, %v116_v59  ;;  %v168_v61 = vmul.f32 %v166_v56, %v166_v56  ;;  %v89_v63 = vsel %vm85_vm0, 1, %v634_v62 }
  0x54   :  { %v171_v6 = vsel %vm169_vm9, %v797_v34, %v157_v57  ;;  %v175_v7 = vsel %vm169_vm9, %v752_v21, %v161_v58  ;;  %v130_v10 = vsel %vm128_vm10, %v126_v49, %v116_v59  ;;  %v134_v11 = vsel %vm128_vm10, %v734_v12, %v120_v60 }
  0x55   :  { %177 = vst [vmem:[#allocation12] sm:$0xff] %v175_v7  ;;  %v183_v14 = vsub.f32 %v171_v6, %v710_v1  ;;  %vm142_vm11 = vcmp.lt.f32.partialorder %v140_v50, %v130_v10  ;;  %v103_v15 = vsel %vm99_vm1, 2, %v89_v63  ;;  %v90_v16 = vsel %vm86_vm4, 1, %v634_v62 }
  0x56   :  { %v144_v17 = vsel %vm142_vm11, %v140_v50, %v130_v10  ;;  %v148_v24 = vsel %vm142_vm11, %v736_v13, %v134_v11  ;;  %v117_v1 = vsel %vm113_vm2, 3, %v103_v15  ;;  %v104_v26 = vsel %vm100_vm6, 2, %v90_v16 }
  0x57   :  { %v898_v18 = vmul.f32 0.2, %v183_v14  ;;  %vm156_vm12 = vcmp.lt.f32.partialorder %v154_v55, %v144_v17  ;;  %v131_v25 = vsel %vm127_vm3, 4, %v117_v1  ;;  %v118_v27 = vsel %vm114_vm8, 3, %v104_v26 }
  0x58   :  { %v158_v28 = vsel %vm156_vm12, %v154_v55, %v144_v17  ;;  %v162_v19 = vsel %vm156_vm12, %v750_v20, %v148_v24  ;;  %v145_v30 = vsel %vm141_vm5, 5, %v131_v25  ;;  %v132_v31 = vsel %vm128_vm10, 4, %v118_v27 }
  0x59   :  { %vm170_vm13 = vcmp.lt.f32.partialorder %v168_v61, %v158_v28  ;;  %v159_v22 = vsel %vm155_vm7, 6, %v145_v30  ;;  %v146_v32 = vsel %vm142_vm11, 5, %v132_v31  ;;  %v189_v33 = vstv %s839_s3 }
  0x5a   :  { %v172_v23 = vsel %vm170_vm13, %v168_v61, %v158_v28  ;;  %v176_v35 = vsel %vm170_vm13, %v752_v21, %v162_v19  ;;  %v173_v36 = vsel %vm169_vm9, 7, %v159_v22  ;;  %v160_v29 = vsel %vm156_vm12, 6, %v146_v32 }
  0x5b   :  { %178 = vst [vmem:[#allocation12 + $0x8] sm:$0xff] %v176_v35  ;;  %v184_v37 = vsub.f32 %v172_v23, %v720_v5  ;;  %179 = vst [vmem:[#allocation14] sm:$0xff] %v173_v36  ;;  %v174_v38 = vsel %vm170_vm13, 7, %v160_v29  ;;  %v190_v34 = vmul.f32 %v189_v33, %v706_v0  ;;  %v193_v39 = vstv %s844_s11 }
  0x5c   :  { %180 = vst [vmem:[#allocation14 + $0x8] sm:$0xff] %v174_v38  ;;  %v211_v40 = vstv %s846_s12  ;;  %v215_v41 = vstv %s857_s13  ;;  %v233_v42 = vstv %s859_s14  ;;  %v237_v43 = vstv %s865_s0 }
  0x5d   :  { %v940_v5 = vmul.f32 0.2, %v184_v37  ;;  %v194_v44 = vadd.f32 %v193_v39, %v190_v34  ;;  %v212_v45 = vmul.f32 %v211_v40, %v706_v0  ;;  %v234_v46 = vmul.f32 %v233_v42, %v706_v0 }
  0x5e   :  { %561 = shalt.err (!%p558_p11)
}
  0x5f   :  { %s562_s9 = scalar_lea.hbm %s1089_s5, 256 }
  0x60   :  { %p563_p12 = scmp.ne.s32.totalorder %s1089_s5, %s562_s9  ;;  %p566_p13 = scmp.lt.u32.totalorder %s562_s9, %s1089_s5 }
  0x62   :  { %p568_p0 = pnand %p566_p13, %p563_p12 }
  0x64   :  { %571 = shalt.err (!%p568_p0)
}
  0x65   :  { %392 = dma.vmem_to_hbm [thread:$0]  %s923_s21, 256, %s1089_s5, [#allocation13], %s632_s24, %s632_s24, %s633_s25   ;;  %v196_v51 = vadd.f32 %v194_v44, %v898_v18  ;;  %v216_v52 = vadd.f32 %v215_v41, %v212_v45  ;;  %v238_v53 = vadd.f32 %v237_v43, %v234_v46 }
  0x66   :  { %v255_v47 = vstv %s867_s15  ;;  %v259_v48 = vstv %s878_s16  ;;  %v277_v49 = vstv %s885_s17  ;;  %v281_v50 = vstv %s887_s18  ;;  %s572_s4 = scalar_lea.vmem %s938_s26, 256  ;;  %p577_p2 = scmp.lt.s32.totalorder %s938_s26, %s938_s26 }
  0x67   :  { %v256_v54 = vmul.f32 %v255_v47, %v706_v0  ;;  %p573_p1 = scmp.ne.s32.totalorder %s938_s26, %s572_s4  ;;  %p578_p3 = scmp.lt.s32.totalorder %s572_s4, %s572_s4 }
  0x69   :  { %p579_p4 = por %p578_p3, %p577_p2 }
  0x6b   :  { %p580_p5 = pnand %p579_p4, %p573_p1 }
  0x6d   :  { %583 = shalt.err (!%p580_p5)
}
  0x6e   :  { %s584_s17 = scalar_lea.hbm %s1090_s6, 256 }
  0x6f   :  { %p585_p6 = scmp.ne.s32.totalorder %s1090_s6, %s584_s17  ;;  %p588_p7 = scmp.lt.u32.totalorder %s584_s17, %s1090_s6 }
  0x71   :  { %p590_p8 = pnand %p588_p7, %p585_p6 }
  0x73   :  { %593 = shalt.err (!%p590_p8)
}
  0x74   :  { %404 = dma.vmem_to_hbm [thread:$0]  %s938_s26, 256, %s1090_s6, [#allocation13], %s632_s24, %s632_s24, %s633_s25   ;;  %v278_v55 = vmul.f32 %v277_v49, %v706_v0  ;;  %v198_v59 = vmul.f32 1.442695, %v196_v51  ;;  %v218_v60 = vadd.f32 %v216_v52, %v898_v18  ;;  %v240_v61 = vadd.f32 %v238_v53, %v898_v18 }
  0x75   :  { %v299_v56 = vstv %s896_s19  ;;  %v303_v57 = vstv %s909_s2  ;;  %v321_v58 = vstv %s911_s22  ;;  %v260_v62 = vadd.f32 %v259_v48, %v256_v54  ;;  %s637_s6 = smov [#allocation11]  }
  0x76   :  { %v282_v63 = vadd.f32 %v281_v50, %v278_v55  ;;  %v300_v6 = vmul.f32 %v299_v56, %v706_v0  ;;  %v322_v7 = vmul.f32 %v321_v58, %v706_v0  ;;  %v325_v10 = vstv %s921_s27  ;;  %s374_s3 = sshll.u32 %s637_s6, 4  ;;  %s375_s3 = int_to_ptr.vmem [resolvable:$true] %s374_s3 }
  0x77   :  { %458 = vpow2.f32 %v198_v59  ;;  %v220_v11 = vmul.f32 1.442695, %v218_v60  ;;  %v242_v14 = vmul.f32 1.442695, %v240_v61  ;;  %v262_v15 = vadd.f32 %v260_v62, %v898_v18  ;;  %s594_s11 = scalar_lea.vmem %s375_s3, 256  ;;  %p599_p10 = scmp.lt.s32.totalorder %s375_s3, %s375_s3 }
  0x78   :  { %v284_v16 = vadd.f32 %v282_v63, %v898_v18  ;;  %v304_v17 = vadd.f32 %v303_v57, %v300_v6  ;;  %v326_v24 = vadd.f32 %v325_v10, %v322_v7  ;;  %v343_v1 = vstv %s930_s28  ;;  %p595_p9 = scmp.ne.s32.totalorder %s375_s3, %s594_s11  ;;  %p600_p11 = scmp.lt.s32.totalorder %s594_s11, %s594_s11 }
  0x79   :  { %460 = vpow2.f32 %v220_v11  ;;  %v264_v26 = vmul.f32 1.442695, %v262_v15  ;;  %v344_v25 = vmul.f32 %v343_v1, %v706_v0  ;;  %v347_v27 = vstv %s936_s29 }
  0x7a   :  { %462 = vpow2.f32 %v242_v14  ;;  %v286_v28 = vmul.f32 1.442695, %v284_v16  ;;  %v306_v19 = vadd.f32 %v304_v17, %v898_v18  ;;  %v328_v30 = vadd.f32 %v326_v24, %v898_v18  ;;  %p601_p12 = por %p600_p11, %p599_p10 }
  0x7b   :  { %464 = vpow2.f32 %v264_v26  ;;  %v348_v31 = vadd.f32 %v347_v27, %v344_v25  ;;  %v191_v22 = vmul.f32 %v189_v33, %v712_v2  ;;  %v213_v32 = vmul.f32 %v211_v40, %v712_v2 }
  0x7c   :  { %466 = vpow2.f32 %v286_v28  ;;  %v308_v23 = vmul.f32 1.442695, %v306_v19  ;;  %v330_v0 = vmul.f32 1.442695, %v328_v30  ;;  %v235_v35 = vmul.f32 %v233_v42, %v712_v2  ;;  %p602_p13 = pnand %p601_p12, %p595_p9 }
  0x7d   :  { %v350_v36 = vadd.f32 %v348_v31, %v898_v18  ;;  %v195_v29 = vadd.f32 %v193_v39, %v191_v22  ;;  %v217_v37 = vadd.f32 %v215_v41, %v213_v32  ;;  %v257_v38 = vmul.f32 %v255_v47, %v712_v2 }
  0x7e   :  { %468 = vpow2.f32 %v308_v23  ;;  %v239_v33 = vadd.f32 %v237_v43, %v235_v35  ;;  %v279_v34 = vmul.f32 %v277_v49, %v712_v2  ;;  %v301_v40 = vmul.f32 %v299_v56, %v712_v2 }
  0x7f   :  { %470 = vpow2.f32 %v330_v0  ;;  %v352_v44 = vmul.f32 1.442695, %v350_v36  ;;  %v197_v45 = vadd.f32 %v195_v29, %v940_v5  ;;  %v219_v42 = vadd.f32 %v217_v37, %v940_v5 }
  0x80   :  { %v241_v18 = vadd.f32 %v239_v33, %v940_v5  ;;  %v261_v39 = vadd.f32 %v259_v48, %v257_v38  ;;  %v283_v41 = vadd.f32 %v281_v50, %v279_v34  ;;  %v305_v46 = vadd.f32 %v303_v57, %v301_v40 }
  0x81   :  { %v459_v47 = vpop.eup %458  ;;  %472 = vpow2.f32 %v352_v44  ;;  %v200_v43 = vmul.f32 1.442695, %v197_v45  ;;  %v222_v51 = vmul.f32 1.442695, %v219_v42  ;;  %v323_v49 = vmul.f32 %v321_v58, %v712_v2 }
  0x82   :  { %v205_v52 = vmul.f32 %v459_v47, %v714_v3  ;;  %v244_v53 = vmul.f32 1.442695, %v241_v18  ;;  %v263_v54 = vadd.f32 %v261_v39, %v940_v5  ;;  %v285_v55 = vadd.f32 %v283_v41, %v940_v5 }
  0x83   :  { %v461_v56 = vpop.eup %460  ;;  %474 = vpow2.f32 %v200_v43  ;;  %v307_v48 = vadd.f32 %v305_v46, %v940_v5  ;;  %v327_v59 = vadd.f32 %v325_v10, %v323_v49  ;;  %v345_v50 = vmul.f32 %v343_v1, %v712_v2 }
  0x84   :  { %v463_v57 = vpop.eup %462  ;;  %v224_v60 = vadd.f32 %v461_v56, %v459_v47  ;;  %v227_v61 = vmul.f32 %v461_v56, %v716_v4  ;;  %476 = vpow2.f32 %v222_v51  ;;  %v266_v58 = vmul.f32 1.442695, %v263_v54 }
  0x85   :  { %v465_v62 = vpop.eup %464  ;;  %v249_v63 = vmul.f32 %v463_v57, %v726_v8  ;;  %478 = vpow2.f32 %v244_v53  ;;  %v288_v6 = vmul.f32 1.442695, %v285_v55  ;;  %v310_v7 = vmul.f32 1.442695, %v307_v48 }
  0x86   :  { %v467_v11 = vpop.eup %466  ;;  %v229_v14 = vadd.f32 %v227_v61, %v205_v52  ;;  %v246_v15 = vadd.f32 %v463_v57, %v224_v60  ;;  %v271_v16 = vmul.f32 %v465_v62, %v728_v9  ;;  %480 = vpow2.f32 %v266_v58 }
  0x87   :  { %v329_v2 = vadd.f32 %v327_v59, %v940_v5  ;;  %v349_v10 = vadd.f32 %v347_v27, %v345_v50  ;;  %482 = vpow2.f32 %v288_v6  ;;  %v293_v25 = vmul.f32 %v467_v11, %v734_v12 }
  0x88   :  { %v469_v17 = vpop.eup %468  ;;  %v251_v24 = vadd.f32 %v249_v63, %v229_v14  ;;  %v268_v1 = vadd.f32 %v465_v62, %v246_v15  ;;  %484 = vpow2.f32 %v310_v7 }
  0x89   :  { %v471_v26 = vpop.eup %470  ;;  %v332_v28 = vmul.f32 1.442695, %v329_v2  ;;  %v351_v19 = vadd.f32 %v349_v10, %v940_v5  ;;  %v315_v27 = vmul.f32 %v469_v17, %v736_v13 }
  0x8a   :  { %v273_v30 = vadd.f32 %v271_v16, %v251_v24  ;;  %v290_v31 = vadd.f32 %v467_v11, %v268_v1  ;;  %v337_v40 = vmul.f32 %v471_v26, %v750_v20 }
  0x8b   :  { %v473_v22 = vpop.eup %472  ;;  %v354_v32 = vmul.f32 1.442695, %v351_v19  ;;  %486 = vpow2.f32 %v332_v28 }
  0x8c   :  { %v312_v23 = vadd.f32 %v469_v17, %v290_v31  ;;  %v295_v35 = vadd.f32 %v293_v25, %v273_v30 }
  0x8d   :  { %v475_v0 = vpop.eup %474  ;;  %488 = vpow2.f32 %v354_v32 }
  0x8e   :  { %v477_v36 = vpop.eup %476  ;;  %v334_v29 = vadd.f32 %v471_v26, %v312_v23  ;;  %v206_v37 = vmul.f32 %v475_v0, %v714_v3  ;;  %v317_v42 = vadd.f32 %v315_v27, %v295_v35 }
  0x8f   :  { %v479_v38 = vpop.eup %478  ;;  %v225_v33 = vadd.f32 %v477_v36, %v475_v0  ;;  %v228_v5 = vmul.f32 %v477_v36, %v716_v4  ;;  %v359_v4 = vmul.f32 %v473_v22, %v752_v21 }
  0x90   :  { %v481_v34 = vpop.eup %480  ;;  %v356_v44 = vadd.f32 %v473_v22, %v334_v29  ;;  %v250_v45 = vmul.f32 %v479_v38, %v726_v8  ;;  %v339_v49 = vadd.f32 %v337_v40, %v317_v42 }
  0x91   :  { %v230_v18 = vadd.f32 %v228_v5, %v206_v37  ;;  %v247_v39 = vadd.f32 %v479_v38, %v225_v33  ;;  %v272_v41 = vmul.f32 %v481_v34, %v728_v9  ;;  %v483_v46 = vpop.eup %482 }
  0x92   :  { %490 = vrcp.f32 %v356_v44  ;;  %v294_v43 = vmul.f32 %v483_v46, %v734_v12  ;;  %v485_v51 = vpop.eup %484  ;;  %v361_v59 = vadd.f32 %v359_v4, %v339_v49 }
  0x93   :  { %v252_v47 = vadd.f32 %v250_v45, %v230_v18  ;;  %v269_v3 = vadd.f32 %v481_v34, %v247_v39  ;;  %v316_v54 = vmul.f32 %v485_v51, %v736_v13 }
  0x95   :  { %v274_v52 = vadd.f32 %v272_v41, %v252_v47  ;;  %v291_v53 = vadd.f32 %v483_v46, %v269_v3  ;;  %v487_v8 = vpop.eup %486 }
  0x96   :  { %v338_v48 = vmul.f32 %v487_v8, %v750_v20 }
  0x97   :  { %v296_v55 = vadd.f32 %v294_v43, %v274_v52  ;;  %v313_v56 = vadd.f32 %v485_v51, %v291_v53  ;;  %v489_v9 = vpop.eup %488 }
  0x98   :  { %v360_v60 = vmul.f32 %v489_v9, %v752_v21 }
  0x99   :  { %v318_v50 = vadd.f32 %v316_v54, %v296_v55  ;;  %v335_v57 = vadd.f32 %v487_v8, %v313_v56 }
  0x9b   :  { %v340_v12 = vadd.f32 %v338_v48, %v318_v50  ;;  %v357_v61 = vadd.f32 %v489_v9, %v335_v57 }
  0x9c   :  { %v491_v58 = vpop.eup %490 }
  0x9d   :  { %v365_v62 = vmul.f32 %v491_v58, %v361_v59  ;;  %v362_v63 = vadd.f32 %v360_v60, %v340_v12  ;;  %492 = vrcp.f32 %v357_v61 }
  0x9f   :  { %367 = vst [vmem:[#allocation11] sm:$0xff] %v365_v62 }
  0xa7   :  { %v493_v13 = vpop.eup %492 }
  0xa8   :  { %v366_v6 = vmul.f32 %v493_v13, %v362_v63 }
  0xaa   :  { %368 = vst [vmem:[#allocation11 + $0x8] sm:$0xff] %v366_v6 }
  0xab   :  { %605 = shalt.err (!%p602_p13)
}
  0xac   :  { %s1093_s14 = sld [smem:[#allocation21_spill]] }
  0xb2   :  { %s606_s0 = scalar_lea.hbm %s1093_s14, 256 }
  0xb3   :  { %p607_p0 = scmp.ne.s32.totalorder %s1093_s14, %s606_s0  ;;  %p610_p1 = scmp.lt.u32.totalorder %s606_s0, %s1093_s14 }
  0xb5   :  { %p612_p2 = pnand %p610_p1, %p607_p0 }
  0xb7   :  { %615 = shalt.err (!%p612_p2)
}
  0xb8   :  { %380 = dma.vmem_to_hbm [thread:$0]  %s375_s3, 256, %s1093_s14, [#allocation4], %s632_s24, %s632_s24, %s633_s25  }
  0xb9   :  { %624 = dma.done.wait [#allocation4], 256  }
  0xba   :  { %625 = vsyncadd [#allocation4], 4294967040 }
  0xbb   :  { %626 = dma.done.wait [#allocation13], 512  }
  0xbc   :  { %627 = vsyncadd [#allocation13], 4294966784 }
  0xbd   :  { %414 = vsyncpa [#allocation3], 1 }
  0xbe   :  { %415 = vsyncpa [#allocation4], 1 }
  0xbf   :  { %416 = vsyncpa [#allocation13], 1 }
  0xc0   :  { %417 = vsyncpa [#allocation5], 1 }
  0xc1   :  { %418 = vsyncpa [#allocation6], 1 }
  0xc2   :  { %419 = vsyncpa [#allocation9], 1 }

</bundles_post_ra>
